<compile_context>
chip_gen: v6e
topology: v6e:2x2x1
jax: 0.10.0
libtpu: 0.0.40
codegen_flags: <defaults>
</compile_context>

<pallas_src>
import functools

import jax
import jax.numpy as jnp
from jax.experimental import pallas as pl
from jax.experimental.pallas import tpu as pltpu

N_STATES = 64
N_HIDDENS = 32
N_ACTIONS = 45          # must be 45 to match the mask-indexing semantics
MASK_LEN = 45
N_PAD = 128             # lane-dense padded action dimension inside the kernel
NEG_BIG = -1e30         # finite "-inf": exp underflows to exactly 0


def _round_up(x, m):
    return (x + m - 1) // m * m


def policy_kernel(x_ref, w1_ref, b1_ref, w2_ref, b2_ref, out_ref):
    x = x_ref[...]                                   # (TB, N_STATES) f32
    tb = x.shape[0]

    # fc1 + ReLU (f32 MXU; matmuls are a tiny fraction of the HBM-bound time)
    h = jnp.maximum(
        jnp.dot(x, w1_ref[...], preferred_element_type=jnp.float32)
        + b1_ref[...], 0.0)                          # (TB, N_HIDDENS)

    # fc2 -> lane-dense (TB, 128) logits. Pad lanes (>= 45) already hold
    # NEG_BIG via the prepared bias, so no iota/column mask is needed here.
    logits = jnp.dot(h, w2_ref[...], preferred_element_type=jnp.float32) \
        + b2_ref[...]                                # (TB, N_PAD)

    # x[mask == 1] = -inf  (mask = input[:, :45]) as an additive penalty on
    # the first N_STATES lanes; lanes 45..63 are already NEG_BIG from the bias.
    penalty = jnp.where(x == 1.0, NEG_BIG, 0.0)      # (TB, N_STATES)
    penalty = jnp.concatenate(
        [penalty, jnp.zeros((tb, N_PAD - N_STATES), jnp.float32)], axis=1)
    logits = logits + penalty

    # softmax over the action dim; masked/pad lanes contribute exactly 0.
    m = jnp.max(logits, axis=1, keepdims=True)
    e = jnp.exp(logits - m)
    s = jnp.sum(e, axis=1, keepdims=True)
    probs = e / s                                    # exact divide (free; HBM-bound)

    out_ref[...] = probs[:, :N_ACTIONS]              # (TB, N_ACTIONS)


def prepare_params(w1, b1, w2, b2):
    """One-time param prep (hoisted out of the forward): pad fc2 to 128 lanes
    and bake the pad-column mask into the bias."""
    w2p = jnp.pad(w2, ((0, 0), (0, N_PAD - N_ACTIONS)))
    b2p = jnp.pad(b2, ((0, 0), (0, N_PAD - N_ACTIONS)), constant_values=NEG_BIG)
    return w1, b1, w2p, b2p


@functools.partial(jax.jit, static_argnames=("block_b",))
def policy_net_forward(x, w1, b1, w2p, b2p, *, block_b=4096):
    """x: (B, N_STATES) f32; params from prepare_params. Returns (B, N_ACTIONS)."""
    B = x.shape[0]
    # >= 2 grid steps when possible (v7x megacore), tile a multiple of 8,
    # capped at block_b (VMEM budget: v5e 16 MiB scoped default -> raised below).
    tb = min(block_b, _round_up(pl.cdiv(B, 2), 8))
    if tb >= B:
        tb = B                                   # single full-batch block
    grid = (pl.cdiv(B, tb),)                     # ragged last block: no jnp.pad

    return pl.pallas_call(
        policy_kernel,
        out_shape=jax.ShapeDtypeStruct((B, N_ACTIONS), jnp.float32),
        grid=grid,
        in_specs=[
            pl.BlockSpec((tb, N_STATES), lambda i: (i, 0)),          # streamed
            pl.BlockSpec((N_STATES, N_HIDDENS), lambda i: (0, 0)),   # resident
            pl.BlockSpec((1, N_HIDDENS), lambda i: (0, 0)),          # resident
            pl.BlockSpec((N_HIDDENS, N_PAD), lambda i: (0, 0)),      # resident
            pl.BlockSpec((1, N_PAD), lambda i: (0, 0)),              # resident
        ],
        # minor dim 45 == full array dim -> legal block; no wrapper slice pass.
        out_specs=pl.BlockSpec((tb, N_ACTIONS), lambda i: (i, 0)),
        compiler_params=pltpu.CompilerParams(
            dimension_semantics=("parallel",),
            vmem_limit_bytes=32 * 1024 * 1024),
    )(x, w1, b1, w2p, b2p)


def init_params(key):
    """Deterministic PyTorch-style Linear init: U(-1/sqrt(fan_in), 1/sqrt(fan_in))."""
    k1, k2, k3, k4 = jax.random.split(key, 4)
    bound1 = 1.0 / (N_STATES ** 0.5)
    bound2 = 1.0 / (N_HIDDENS ** 0.5)
    w1 = jax.random.uniform(k1, (N_STATES, N_HIDDENS), jnp.float32, -bound1, bound1)
    b1 = jax.random.uniform(k2, (1, N_HIDDENS), jnp.float32, -bound1, bound1)
    w2 = jax.random.uniform(k3, (N_HIDDENS, N_ACTIONS), jnp.float32, -bound2, bound2)
    b2 = jax.random.uniform(k4, (1, N_ACTIONS), jnp.float32, -bound2, bound2)
    return w1, b1, w2, b2


def reference_forward(x, w1, b1, w2, b2):
    """Pure-JAX reference mirroring the PyTorch forward (f32 throughout)."""
    hp = jax.lax.Precision.HIGHEST
    h = jnp.maximum(jnp.dot(x, w1, precision=hp) + b1, 0.0)
    logits = jnp.dot(h, w2, precision=hp) + b2
    logits = jnp.where(x[:, :MASK_LEN] == 1.0, -jnp.inf, logits)
    return jax.nn.softmax(logits, axis=1)


def _make_batch(key, b):
    ka, kb = jax.random.split(key)
    x = jax.random.uniform(ka, (b, N_STATES), jnp.float32, 0.0, 2.0)
    hit = jax.random.bernoulli(kb, 0.3, (b, MASK_LEN))
    return x.at[:, :MASK_LEN].set(jnp.where(hit, 1.0, x[:, :MASK_LEN]))


if __name__ == "__main__":
    key = jax.random.PRNGKey(0)
    k_params, k_x1, k_x2 = jax.random.split(key, 3)
    w1, b1, w2, b2 = init_params(k_params)
    w1p, b1p, w2p, b2p = prepare_params(w1, b1, w2, b2)   # one-time prep

    # small demo batch (per-step RL acting). TODO(synk): at B~8 this call is
    # pure launch/DMA overhead — batch many environments/timesteps per call
    # or fuse into the surrounding computation in real use.
    B = 8
    x = _make_batch(k_x1, B)
    out = policy_net_forward(x, w1p, b1p, w2p, b2p)
    jax.block_until_ready(out)
    ref = reference_forward(x, w1, b1, w2, b2)

    assert out.shape == (B, N_ACTIONS)
    assert bool(jnp.allclose(out, ref, atol=2e-3, rtol=2e-3))
    # masked actions must get exactly zero probability
    assert bool(jnp.all(jnp.where(x[:, :MASK_LEN] == 1.0, out, 0.0) == 0.0))
    # rows are normalized (exact divide in-kernel)
    assert bool(jnp.allclose(jnp.sum(out, axis=1), 1.0, atol=1e-4))

    # exercise grid > 1 + ragged last block (no padding copy of x), default tile
    B2 = 300
    x2 = _make_batch(k_x2, B2)
    out2 = policy_net_forward(x2, w1p, b1p, w2p, b2p)
    jax.block_until_ready(out2)
    ref2 = reference_forward(x2, w1, b1, w2, b2)
    assert out2.shape == (B2, N_ACTIONS)
    assert bool(jnp.allclose(out2, ref2, atol=2e-3, rtol=2e-3))
    assert bool(jnp.all(jnp.where(x2[:, :MASK_LEN] == 1.0, out2, 0.0) == 0.0))
    assert bool(jnp.allclose(jnp.sum(out2, axis=1), 1.0, atol=1e-4))

    # small explicit tile -> several grid steps, resident weights reused
    out3 = policy_net_forward(x2, w1p, b1p, w2p, b2p, block_b=64)
    jax.block_until_ready(out3)
    assert bool(jnp.allclose(out3, ref2, atol=2e-3, rtol=2e-3))

    print("KERNEL_OK")
</pallas_src>

<mosaic_0001>
module attributes {stable_mosaic.version = 11 : i64} {
  func.func @policy_kernel(%arg0: i32, %arg1: memref<8x64xf32, #tpu.memory_space<vmem>>, %arg2: memref<64x32xf32, #tpu.memory_space<vmem>>, %arg3: memref<1x32xf32, #tpu.memory_space<vmem>>, %arg4: memref<32x128xf32, #tpu.memory_space<vmem>>, %arg5: memref<1x128xf32, #tpu.memory_space<vmem>>, %arg6: memref<8x45xf32, #tpu.memory_space<vmem>>) attributes {dimension_semantics = [#tpu.dimension_semantics<parallel>], iteration_bounds = array<i64: 1>, scalar_prefetch = 0 : i64, scratch_operands = 0 : i64, tpu.core_type = #tpu.core_type<tc>, window_params = [{transform_indices = @transform_0, window_bounds = array<i64: 8, 64>}, {pipeline_mode = #tpu.pipeline_mode<synchronous>, transform_indices = @transform_1, window_bounds = array<i64: 64, 32>}, {pipeline_mode = #tpu.pipeline_mode<synchronous>, transform_indices = @transform_2, window_bounds = array<i64: 1, 32>}, {pipeline_mode = #tpu.pipeline_mode<synchronous>, transform_indices = @transform_3, window_bounds = array<i64: 32, 128>}, {pipeline_mode = #tpu.pipeline_mode<synchronous>, transform_indices = @transform_4, window_bounds = array<i64: 1, 128>}, {transform_indices = @transform_5, window_bounds = array<i64: 8, 45>}]} {
    %c0 = arith.constant 0 : index
    %c0_0 = arith.constant 0 : index
    %0 = vector.load %arg1[%c0, %c0_0] : memref<8x64xf32, #tpu.memory_space<vmem>>, vector<8x64xf32>
    %c0_1 = arith.constant 0 : index
    %c0_2 = arith.constant 0 : index
    %1 = vector.load %arg2[%c0_1, %c0_2] : memref<64x32xf32, #tpu.memory_space<vmem>>, vector<64x32xf32>
    %cst = arith.constant dense<0.000000e+00> : vector<8x32xf32>
    %2 = tpu.matmul %0, %1, %cst {dimension_numbers = #tpu.dot_dimension_numbers<[1], [0], [0], [1], [0, 0, 1, 1], [], []>} : vector<8x64xf32>, vector<64x32xf32>, vector<8x32xf32> -> vector<8x32xf32>
    %c0_3 = arith.constant 0 : index
    %c0_4 = arith.constant 0 : index
    %3 = vector.load %arg3[%c0_3, %c0_4] : memref<1x32xf32, #tpu.memory_space<vmem>>, vector<1x32xf32>
    %4 = vector.broadcast %3 : vector<1x32xf32> to vector<8x32xf32>
    %5 = arith.addf %2, %4 : vector<8x32xf32>
    %cst_5 = arith.constant 0.000000e+00 : f32
    %6 = vector.broadcast %cst_5 : f32 to vector<8x32xf32>
    %7 = arith.maximumf %5, %6 : vector<8x32xf32>
    %c0_6 = arith.constant 0 : index
    %c0_7 = arith.constant 0 : index
    %8 = vector.load %arg4[%c0_6, %c0_7] : memref<32x128xf32, #tpu.memory_space<vmem>>, vector<32x128xf32>
    %cst_8 = arith.constant dense<0.000000e+00> : vector<8x128xf32>
    %9 = tpu.matmul %7, %8, %cst_8 {dimension_numbers = #tpu.dot_dimension_numbers<[1], [0], [0], [1], [0, 0, 1, 1], [], []>} : vector<8x32xf32>, vector<32x128xf32>, vector<8x128xf32> -> vector<8x128xf32>
    %c0_9 = arith.constant 0 : index
    %c0_10 = arith.constant 0 : index
    %10 = vector.load %arg5[%c0_9, %c0_10] : memref<1x128xf32, #tpu.memory_space<vmem>>, vector<1x128xf32>
    %11 = vector.broadcast %10 : vector<1x128xf32> to vector<8x128xf32>
    %12 = arith.addf %9, %11 : vector<8x128xf32>
    %cst_11 = arith.constant 1.000000e+00 : f32
    %13 = vector.broadcast %cst_11 : f32 to vector<8x64xf32>
    %14 = arith.cmpf oeq, %0, %13 : vector<8x64xf32>
    %cst_12 = arith.constant -1.000000e+30 : f32
    %cst_13 = arith.constant 0.000000e+00 : f32
    %15 = vector.broadcast %cst_12 : f32 to vector<8x64xf32>
    %16 = vector.broadcast %cst_13 : f32 to vector<8x64xf32>
    %17 = arith.select %14, %15, %16 : vector<8x64xi1>, vector<8x64xf32>
    %cst_14 = arith.constant 0.000000e+00 : f32
    %18 = vector.broadcast %cst_14 : f32 to vector<8x64xf32>
    %19 = tpu.concatenate %17, %18 in 1 : vector<8x64xf32>, vector<8x64xf32> -> vector<8x128xf32>
    %20 = arith.addf %12, %19 : vector<8x128xf32>
    %cst_15 = arith.constant dense<0xFF800000> : vector<8xf32>
    %21 = vector.multi_reduction <maximumf>, %20, %cst_15 [1] : vector<8x128xf32> to vector<8xf32>
    %22 = vector.shape_cast %21 : vector<8xf32> to vector<8x1xf32>
    %23 = vector.broadcast %22 : vector<8x1xf32> to vector<8x128xf32>
    %24 = arith.subf %20, %23 : vector<8x128xf32>
    %25 = math.exp %24 : vector<8x128xf32>
    %cst_16 = arith.constant dense<0.000000e+00> : vector<8xf32>
    %26 = vector.multi_reduction <add>, %25, %cst_16 [1] : vector<8x128xf32> to vector<8xf32>
    %27 = vector.shape_cast %26 : vector<8xf32> to vector<8x1xf32>
    %28 = vector.broadcast %27 : vector<8x1xf32> to vector<8x128xf32>
    %29 = arith.divf %25, %28 : vector<8x128xf32>
    %30 = vector.extract_strided_slice %29 {offsets = [0, 0], sizes = [8, 45], strides = [1, 1]} : vector<8x128xf32> to vector<8x45xf32>
    %c0_17 = arith.constant 0 : index
    %c0_18 = arith.constant 0 : index
    %31 = vector.load %arg6[%c0_17, %c0_18] : memref<8x45xf32, #tpu.memory_space<vmem>>, vector<8x45xf32>
    tpu.vector_store %arg6[%c0_17, %c0_18], %30 {strides = array<i32>} : memref<8x45xf32, #tpu.memory_space<vmem>>, vector<8x45xf32>,
    return
  }
  func.func @transform_0(%arg0: i32) -> (i32, i32) {
    %c0_i32 = arith.constant 0 : i32
    %c0_i32_0 = arith.constant 0 : i32
    return %arg0, %c0_i32 : i32, i32
  }
  func.func @transform_1(%arg0: i32) -> (i32, i32) {
    %c0_i32 = arith.constant 0 : i32
    %c0_i32_0 = arith.constant 0 : i32
    %c0_i32_1 = arith.constant 0 : i32
    return %c0_i32, %c0_i32_0 : i32, i32
  }
  func.func @transform_2(%arg0: i32) -> (i32, i32) {
    %c0_i32 = arith.constant 0 : i32
    %c0_i32_0 = arith.constant 0 : i32
    %c0_i32_1 = arith.constant 0 : i32
    return %c0_i32, %c0_i32_0 : i32, i32
  }
  func.func @transform_3(%arg0: i32) -> (i32, i32) {
    %c0_i32 = arith.constant 0 : i32
    %c0_i32_0 = arith.constant 0 : i32
    %c0_i32_1 = arith.constant 0 : i32
    return %c0_i32, %c0_i32_0 : i32, i32
  }
  func.func @transform_4(%arg0: i32) -> (i32, i32) {
    %c0_i32 = arith.constant 0 : i32
    %c0_i32_0 = arith.constant 0 : i32
    %c0_i32_1 = arith.constant 0 : i32
    return %c0_i32, %c0_i32_0 : i32, i32
  }
  func.func @transform_5(%arg0: i32) -> (i32, i32) {
    %c0_i32 = arith.constant 0 : i32
    %c0_i32_0 = arith.constant 0 : i32
    return %arg0, %c0_i32 : i32, i32
  }
}

</mosaic_0001>

<bundles_post_ra>
// kernel: policy_net_forward.1
= control target key start
LH: loop header
LB: loop body
LE: loop exit
PB: predicated region body
PF: predicated region fallthrough
CT: control target
= control target key end

     0   :  { %v303_v1 = vmov 0.0   ;;  %vm304_vm0 = vmmov 0   ;;  %s386_s0 = inlined_call_operand.vmem [shape: f32[8,64], index: 0, kind: input, shape index: {}]   ;;  %s387_s1 = inlined_call_operand.vmem [shape: f32[64,32], index: 1, kind: input, shape index: {}]   ;;  %s388_s2 = inlined_call_operand.vmem [shape: f32[1,32], index: 2, kind: input, shape index: {}]   ;;  %s389_s3 = inlined_call_operand.vmem [shape: f32[32,128], index: 3, kind: input, shape index: {}]   ;;  %s390_s4 = inlined_call_operand.vmem [shape: f32[1,128], index: 4, kind: input, shape index: {}]   ;;  %s391_s5 = inlined_call_operand.hbm [shape: f32[8,45], index: 5, kind: output, shape index: {}]  }
   0x1   :  { %v29_v0 = vld [vmem:[%s387_s1 + $0x38] sm:$0xff]  ;;  %244 = vmatprep.subr.mxu0 %v303_v1  ;;  %v28_v2 = vld [vmem:[%s387_s1 + $0x30] sm:$0xff]  ;;  %260 = vmatprep.mubr.msk.f32.mxu0 %vm304_vm0, %v303_v1  ;;  %v27_v3 = vld [vmem:[%s387_s1 + $0x28] sm:$0xff] }
   0x2   :  { %245 = vmatpush3.msra.mxu0 %v29_v0  ;;  %263 = vmatprep.subr.mxu1 %v303_v1  ;;  %v115_v4 = vld [vmem:[%s389_s3 + $0x18] sm:$0xff] }
   0x3   :  { %246 = vmatprep.subr.mxu0 %v303_v1  ;;  %271 = vmatprep.mubr.msk.f32.mxu1 %vm304_vm0, %v303_v1 }
   0x4   :  { %10 = vsyncpa [#allocation3], 0  ;;  %247 = vmatpush3.msra.mxu0 %v28_v2  ;;  %264 = vmatpush3.msra.mxu1 %v115_v4  ;;  %v26_v5 = vld [vmem:[%s387_s1 + $0x20] sm:$0xff]  ;;  %v25_v6 = vld [vmem:[%s387_s1 + $0x18] sm:$0xff]  ;;  %vm37_vm1 = vcmask 523264   ;;  %vm123_vm2 = vcmask 261120  }
   0x5   :  { %248 = vmatprep.subr.mxu0 %v303_v1  ;;  %265 = vmatprep.subr.mxu1 %v303_v1  ;;  %v24_v7 = vld [vmem:[%s387_s1 + $0x10] sm:$0xff]  ;;  %v23_v8 = vld [vmem:[%s387_s1 + $0x8] sm:$0xff]  ;;  %v22_v9 = vld [vmem:[%s387_s1] sm:$0xff]  ;;  %vm210_vm4 = vcmask 367616  }
   0x6   :  { %249 = vmatpush3.msra.mxu0 %v27_v3  ;;  %v21_v10 = vld [vmem:[%s386_s0] sm:$0xff]  ;;  %v114_v11 = vld [vmem:[%s389_s3 + $0x10] sm:$0xff]  ;;  %v113_v12 = vld [vmem:[%s389_s3 + $0x8] sm:$0xff] }
   0x7   :  { %250 = vmatprep.subr.mxu0 %v303_v1  ;;  %266 = vmatpush3.msra.mxu1 %v114_v11  ;;  %v112_v13 = vld [vmem:[%s389_s3] sm:$0xff]  ;;  %vm197_vm3 = vcmp.eq.f32.partialorder %v21_v10, 1.0 }
   0x8   :  { %251 = vmatpush3.msra.mxu0 %v26_v5  ;;  %267 = vmatprep.subr.mxu1 %v303_v1  ;;  %v226_v14 = vld [vmem:[%s388_s2] ss:$0 sm:$0xff]  ;;  %v198_v19 = vsel %vm197_vm3, -1e+30, %v303_v1  ;;  %s305_s2 = smov [#allocation2]  }
   0x9   :  { %252 = vmatprep.subr.mxu0 %v303_v1  ;;  %268 = vmatpush3.msra.mxu1 %v113_v12  ;;  %v228_v20 = vld [vmem:[%s390_s4] ss:$0 sm:$0xff]  ;;  %v199_v22 = vsel %vm37_vm1, %v198_v19, 0.0  ;;  %s218_s3 = sshll.u32 %s305_s2, 4  ;;  %s219_s3 = int_to_ptr.vmem [resolvable:$true] %s218_s3 }
   0xa   :  { %253 = vmatpush3.msra.mxu0 %v25_v6  ;;  %269 = vmatprep.subr.mxu1 %v303_v1  ;;  %s281_s4 = scalar_lea.vmem %s219_s3, 128  ;;  %p286_p1 = scmp.lt.s32.totalorder %s219_s3, %s219_s3 }
   0xb   :  { %254 = vmatprep.subr.mxu0 %v303_v1  ;;  %270 = vmatpush3.msra.mxu1 %v112_v13  ;;  %p282_p0 = scmp.ne.s32.totalorder %s219_s3, %s281_s4  ;;  %p287_p2 = scmp.lt.s32.totalorder %s281_s4, %s281_s4 }
   0xc   :  { %255 = vmatpush3.msra.mxu0 %v24_v7 }
   0xd   :  { %256 = vmatprep.subr.mxu0 %v303_v1  ;;  %p288_p3 = por %p287_p2, %p286_p1 }
   0xe   :  { %257 = vmatpush3.msra.mxu0 %v23_v8 }
   0xf   :  { %258 = vmatprep.subr.mxu0 %v303_v1  ;;  %p289_p4 = pnand %p288_p3, %p282_p0 }
  0x10   :  { %259 = vmatpush3.msra.mxu0 %v22_v9 }
  0x11   :  { %261 = vmatmul.mubr.msk.f32.vlgmr.msra.gmra.mxu0 %vm37_vm1, %v21_v10 }
  0xd1   :  { %v107_v15 = vpop.f32.mrf.mxu0 }
  0xd2   :  { %v108_v16 = vadd.f32 %v226_v14, %v107_v15 }
  0xd3   :  { %v262_v17 = vpop.f32.mrf.mxu0 }
  0xd4   :  { %v111_v18 = vmax.f32 %v108_v16, 0.0 }
  0xd6   :  { %272 = vmatmul.mubr.msk.f32.vlgmr.msra.gmra.mxu1 %vm123_vm2, %v111_v18 }
 0x196   :  { %v193_v21 = vpop.f32.mrf.mxu1 }
 0x197   :  { %v194_v23 = vadd.f32 %v228_v20, %v193_v21 }
 0x198   :  { %v273_v24 = vpop.f32.mrf.mxu1 }
 0x199   :  { %v200_v25 = vadd.f32 %v199_v22, %v194_v23 }
 0x19b   :  { %201 = vmax.xlane.f32.xlu0 %v200_v25 }
 0x224   :  { %v202_v26 = vpop.xlane.xlu0 %201 }
 0x225   :  { %v203_v27 = vsub.f32 %v200_v25, %v202_v26 }
 0x227   :  { %v204_v28 = vmul.f32 1.442695, %v203_v27 }
 0x229   :  { %277 = vpow2.f32 %v204_v28 }
 0x236   :  { %v278_v29 = vpop.eup %277 }
 0x237   :  { %206 = vadd.xlane.f32.xlu0 %v278_v29 }
 0x2c0   :  { %v207_v30 = vpop.xlane.xlu0 %206 }
 0x2c1   :  { %279 = vrcp.f32 %v207_v30 }
 0x2ce   :  { %v280_v31 = vpop.eup %279 }
 0x2cf   :  { %v209_v32 = vmul.f32 %v280_v31, %v278_v29 }
 0x2d1   :  { %211 = vst.msk [vmem:[#allocation2] sm:$0xff] %vm210_vm4, %v209_v32 }
 0x2d2   :  { %292 = shalt.err (!%p289_p4)
}
 0x2d3   :  { %221 = dma.vmem_to_hbm [thread:$0]  %s219_s3, 128, %s391_s5, [#allocation3]  }
 0x2d4   :  { %301 = dma.done.wait [#allocation3], 128  }
 0x2d5   :  { %302 = vsyncadd [#allocation3], 4294967168 }
 0x2d6   :  { %225 = vsyncpa [#allocation3], 1 }

</bundles_post_ra>
